<compile_context>
chip_gen: v7x
topology: tpu7x:2x2x1
jax: 0.10.0
libtpu: 0.0.40
codegen_flags: <defaults>
</compile_context>

<pallas_src>
import functools

import jax
import jax.numpy as jnp
import numpy as np
from jax.experimental import pallas as pl
from jax.experimental.pallas import tpu as pltpu


def _round_up(x, m):
    return ((x + m - 1) // m) * m


def _bottleneck_kernel(scale_ref, shift_ref, mask_ref, x_ref, w_ref, b_ref,
                       o_ref, *, NB, H, W, HWP, KH, KW, P, C_in, C_pad):
    scale = scale_ref[...]                       # (C_in, 1)
    shift = shift_ref[...]                       # (C_in, 1)
    w_mat = w_ref[...]                           # (C_out, KH*KW*C_pad)
    bias = b_ref[...]                            # (C_out, 1)

    n_taps = KH * KW
    # Hoisted: load all border masks once per grid step (not per image/tap).
    masks = mask_ref[...] if n_taps > 1 else None        # (KH*KW, 1, HWP)
    # Hoisted: zero rows used to pad channels to a full sublane group.
    zpad = (jnp.zeros((C_pad - C_in, HWP), jnp.float32)
            if C_pad > C_in else None)

    cols_per_image = []
    for n in range(NB):                          # static unroll; NB is small
        x = x_ref[n].astype(jnp.float32)         # (C_in, HWP) lane-dense load
        y = jnp.maximum(x * scale + shift, 0.0)  # fused BN affine + ReLU
        if zpad is not None:
            y = jnp.concatenate([y, zpad], axis=0)       # (C_pad, HWP)

        # im2col via lane rolls (XLU) + 0/1 border masks; each tap is an
        # 8-aligned (C_pad, HWP) tile so the concat is pure vreg packing.
        taps = []
        for kh in range(KH):
            for kw in range(KW):
                dh, dw = kh - P, kw - P
                if dh == 0 and dw == 0:
                    taps.append(y)                       # center tap: no mask
                else:
                    delta = dh * W + dw
                    rolled = pltpu.roll(y, shift=(-delta) % HWP, axis=1)
                    taps.append(rolled * masks[kh * KW + kw])
        cols_per_image.append(taps[0] if n_taps == 1
                              else jnp.concatenate(taps, axis=0))

    # Fold all images of this grid step into the lane axis -> ONE matmul.
    cols = (cols_per_image[0] if NB == 1
            else jnp.concatenate(cols_per_image, axis=1))        # (K, NB*HWP)

    out = jnp.dot(w_mat, cols, preferred_element_type=jnp.float32) + bias
    for n in range(NB):                                   # lane-aligned slices
        o_ref[n] = out[:, n * HWP:(n + 1) * HWP].astype(o_ref.dtype)


def _tpu_cores_and_vmem():
    """Core count + VMEM capacity via pltpu.get_tpu_info (robust fallbacks)."""
    cores, vmem = 1, 128 << 20
    try:
        info = pltpu.get_tpu_info()
        for attr in ("vmem_capacity_bytes", "vmem_bytes", "vmem_size_bytes"):
            v = getattr(info, attr, None)
            if v:
                vmem = int(v)
                break
        for attr in ("num_cores", "num_tensorcores", "tensorcores_per_chip",
                     "cores_per_chip"):
            c = getattr(info, attr, None)
            if c:
                cores = int(c)
                break
    except Exception:
        pass
    return max(int(cores), 1), int(vmem)


def _choose_images_per_step(N, C_in, C_out, C_pad, HWP, KH, KW, x_itemsize):
    """Fold as many images per grid step as VMEM allows, one step per core."""
    cores, vmem = _tpu_cores_and_vmem()
    budget = min(vmem // 4, 32 << 20)     # conservative; leaves pipeline headroom

    def step_bytes(nb):
        x_b = nb * C_in * HWP * x_itemsize          # double-buffered input block
        o_b = nb * C_out * HWP * 4                  # double-buffered output block
        cols_b = KH * KW * C_pad * nb * HWP * 4     # im2col intermediate (+taps)
        w_b = C_out * KH * KW * C_pad * 4
        m_b = KH * KW * HWP * 4
        return 2 * (x_b + o_b) + 2 * cols_b + w_b + m_b

    nb = max(1, N // cores)               # one grid step per TensorCore
    while nb > 1 and (N % nb != 0 or step_bytes(nb) > budget):
        nb -= 1
    while N % nb != 0:
        nb -= 1
    return nb


def bottleneck_forward(x_nchw, gamma, beta, conv_w, conv_b, *, stride, padding,
                       eps=1e-5):
    """x_nchw: (N, C_in, H, W); conv_w: (C_out, C_in, KH, KW) (PyTorch layouts)."""
    N, C_in, H, W = x_nchw.shape
    C_out, _, KH, KW = conv_w.shape
    P = padding
    if not (stride == 1 and 2 * P <= KH - 1 and 2 * P <= KW - 1):
        # TODO(synk): strided / heavily-padded convs are not in the Pallas path;
        # fall back to the pure-JAX reference instead of asserting.
        return bottleneck_reference(x_nchw, gamma, beta, conv_w, conv_b,
                                    stride=stride, padding=padding, eps=eps)
    HO = (H + 2 * P - KH) // stride + 1
    WO = (W + 2 * P - KW) // stride + 1

    # BatchNorm2d training-mode stats: one fused pass (sum + sum-of-squares,
    # f32 accumulation, biased variance); folded to per-channel scale/shift.
    cnt = N * H * W
    s1 = jnp.sum(x_nchw, axis=(0, 2, 3), dtype=jnp.float32)
    s2 = jnp.sum(jnp.square(x_nchw.astype(jnp.float32)), axis=(0, 2, 3))
    mean = s1 / cnt
    var = jnp.maximum(s2 / cnt - mean * mean, 0.0)
    scale = (gamma.astype(jnp.float32) / jnp.sqrt(var + eps)).reshape(C_in, 1)
    shift = beta.astype(jnp.float32).reshape(C_in, 1) - mean.reshape(C_in, 1) * scale

    # Lane/sublane-aligned operands: spatial on lanes (padded to 128-multiple),
    # channels on sublanes (padded to 8 inside the kernel; weights padded here).
    HW = H * W
    HWP = _round_up(HW, 128)
    C_pad = _round_up(C_in, 8)

    x_flat = x_nchw.reshape(N, C_in, HW)          # original dtype; cast in-kernel
    if HWP != HW:
        x_flat = jnp.pad(x_flat, ((0, 0), (0, 0), (0, HWP - HW)))

    w_t = jnp.transpose(conv_w, (0, 2, 3, 1)).astype(jnp.float32)  # (C_out,KH,KW,C_in)
    if C_pad != C_in:
        w_t = jnp.pad(w_t, ((0, 0), (0, 0), (0, 0), (0, C_pad - C_in)))
    w_mat = w_t.reshape(C_out, KH * KW * C_pad)
    bias = conv_b.reshape(C_out, 1).astype(jnp.float32)

    # Per-tap 0/1 border masks (trace-time numpy); padded lanes (>= HW) zeroed.
    f = np.arange(HWP)
    row, col = f // W, f % W
    lane_ok = f < HW
    masks_np = np.zeros((KH * KW, 1, HWP), np.float32)
    for kh in range(KH):
        for kw in range(KW):
            dh, dw = kh - P, kw - P
            masks_np[kh * KW + kw, 0, :] = ((row + dh >= 0) & (row + dh < H) &
                                            (col + dw >= 0) & (col + dw < W) &
                                            lane_ok)
    masks = jnp.asarray(masks_np)

    NB = _choose_images_per_step(N, C_in, C_out, C_pad, HWP, KH, KW,
                                 x_flat.dtype.itemsize)
    G = N // NB

    kernel = functools.partial(_bottleneck_kernel, NB=NB, H=H, W=W, HWP=HWP,
                               KH=KH, KW=KW, P=P, C_in=C_in, C_pad=C_pad)

    out_flat = pl.pallas_call(
        kernel,
        out_shape=jax.ShapeDtypeStruct((N, C_out, HWP), jnp.float32),
        grid=(G,),
        in_specs=[
            pl.BlockSpec((C_in, 1), lambda g: (0, 0)),                   # scale
            pl.BlockSpec((C_in, 1), lambda g: (0, 0)),                   # shift
            pl.BlockSpec((KH * KW, 1, HWP), lambda g: (0, 0, 0)),        # masks
            pl.BlockSpec((NB, C_in, HWP), lambda g: (g, 0, 0)),          # x
            pl.BlockSpec((C_out, KH * KW * C_pad), lambda g: (0, 0)),    # weights
            pl.BlockSpec((C_out, 1), lambda g: (0, 0)),                  # bias
        ],
        out_specs=pl.BlockSpec((NB, C_out, HWP), lambda g: (g, 0, 0)),
        compiler_params=pltpu.CompilerParams(
            dimension_semantics=("parallel",)),
    )(scale, shift, masks, x_flat, w_mat, bias)

    out = out_flat[:, :, :HW] if HWP != HW else out_flat
    out = out.reshape(N, C_out, H, W)              # already NCHW — no transpose
    if HO != H or WO != W:
        out = out[:, :, :HO, :WO]
    return out


def bottleneck_reference(x, gamma, beta, conv_w, conv_b, *, stride, padding,
                         eps=1e-5):
    """Pure-JAX reference (NCHW), mirrors PyTorch training-mode forward."""
    x = x.astype(jnp.float32)
    mean = jnp.mean(x, axis=(0, 2, 3), keepdims=True)
    var = jnp.mean((x - mean) ** 2, axis=(0, 2, 3), keepdims=True)
    y = (x - mean) / jnp.sqrt(var + eps)
    y = y * gamma[None, :, None, None] + beta[None, :, None, None]
    y = jnp.maximum(y, 0.0)
    out = jax.lax.conv_general_dilated(
        y, conv_w, window_strides=(stride, stride),
        padding=[(padding, padding), (padding, padding)],
        dimension_numbers=("NCHW", "OIHW", "NCHW"))
    return out + conv_b[None, :, None, None]


if __name__ == "__main__":
    N, C_IN, H, W = 2, 4, 16, 16
    C_OUT = 8

    key = jax.random.PRNGKey(0)
    kx, kg, kb, kw3, kb3, kw1, kb1 = jax.random.split(key, 7)

    x = jax.random.normal(kx, (N, C_IN, H, W), dtype=jnp.float32)
    gamma = 1.0 + 0.1 * jax.random.normal(kg, (C_IN,), dtype=jnp.float32)
    beta = 0.1 * jax.random.normal(kb, (C_IN,), dtype=jnp.float32)

    # 3x3 / stride 1 / pad 1 Bottleneck config.
    w3 = 0.1 * jax.random.normal(kw3, (C_OUT, C_IN, 3, 3), dtype=jnp.float32)
    b3 = 0.1 * jax.random.normal(kb3, (C_OUT,), dtype=jnp.float32)
    out3 = jax.block_until_ready(
        bottleneck_forward(x, gamma, beta, w3, b3, stride=1, padding=1))
    ref3 = jax.block_until_ready(
        bottleneck_reference(x, gamma, beta, w3, b3, stride=1, padding=1))
    assert out3.shape == (N, C_OUT, H, W), out3.shape
    np.testing.assert_allclose(np.asarray(out3), np.asarray(ref3),
                               rtol=1e-4, atol=1e-4)

    # 1x1 / stride 1 / pad 0 Bottleneck config (the `btl1` shape in `Main`,
    # at toy channel counts).
    w1 = 0.1 * jax.random.normal(kw1, (C_OUT, C_IN, 1, 1), dtype=jnp.float32)
    b1 = 0.1 * jax.random.normal(kb1, (C_OUT,), dtype=jnp.float32)
    out1 = jax.block_until_ready(
        bottleneck_forward(x, gamma, beta, w1, b1, stride=1, padding=0))
    ref1 = jax.block_until_ready(
        bottleneck_reference(x, gamma, beta, w1, b1, stride=1, padding=0))
    assert out1.shape == (N, C_OUT, H, W), out1.shape
    np.testing.assert_allclose(np.asarray(out1), np.asarray(ref1),
                               rtol=1e-4, atol=1e-4)

    print("KERNEL_OK")
</pallas_src>

<mosaic_0001>
module attributes {stable_mosaic.version = 11 : i64} {
  func.func @_bottleneck_kernel(%arg0: i32, %arg1: memref<4x1xf32, #tpu.memory_space<vmem>>, %arg2: memref<4x1xf32, #tpu.memory_space<vmem>>, %arg3: memref<9x1x256xf32, #tpu.memory_space<vmem>>, %arg4: memref<2x4x256xf32, #tpu.memory_space<vmem>>, %arg5: memref<8x72xf32, #tpu.memory_space<vmem>>, %arg6: memref<8x1xf32, #tpu.memory_space<vmem>>, %arg7: memref<2x8x256xf32, #tpu.memory_space<vmem>>) attributes {dimension_semantics = [#tpu.dimension_semantics<parallel>], iteration_bounds = array<i64: 1>, scalar_prefetch = 0 : i64, scratch_operands = 0 : i64, tpu.core_type = #tpu.core_type<tc>, window_params = [{pipeline_mode = #tpu.pipeline_mode<synchronous>, transform_indices = @transform_0, window_bounds = array<i64: 4, 1>}, {pipeline_mode = #tpu.pipeline_mode<synchronous>, transform_indices = @transform_1, window_bounds = array<i64: 4, 1>}, {pipeline_mode = #tpu.pipeline_mode<synchronous>, transform_indices = @transform_2, window_bounds = array<i64: 9, 1, 256>}, {transform_indices = @transform_3, window_bounds = array<i64: 2, 4, 256>}, {pipeline_mode = #tpu.pipeline_mode<synchronous>, transform_indices = @transform_4, window_bounds = array<i64: 8, 72>}, {pipeline_mode = #tpu.pipeline_mode<synchronous>, transform_indices = @transform_5, window_bounds = array<i64: 8, 1>}, {transform_indices = @transform_6, window_bounds = array<i64: 2, 8, 256>}]} {
    %c0 = arith.constant 0 : index
    %c0_0 = arith.constant 0 : index
    %0 = vector.load %arg1[%c0, %c0_0] : memref<4x1xf32, #tpu.memory_space<vmem>>, vector<4x1xf32>
    %c0_1 = arith.constant 0 : index
    %c0_2 = arith.constant 0 : index
    %1 = vector.load %arg2[%c0_1, %c0_2] : memref<4x1xf32, #tpu.memory_space<vmem>>, vector<4x1xf32>
    %c0_3 = arith.constant 0 : index
    %c0_4 = arith.constant 0 : index
    %2 = vector.load %arg5[%c0_3, %c0_4] : memref<8x72xf32, #tpu.memory_space<vmem>>, vector<8x72xf32>
    %c0_5 = arith.constant 0 : index
    %c0_6 = arith.constant 0 : index
    %3 = vector.load %arg6[%c0_5, %c0_6] : memref<8x1xf32, #tpu.memory_space<vmem>>, vector<8x1xf32>
    %c0_7 = arith.constant 0 : index
    %c0_8 = arith.constant 0 : index
    %c0_9 = arith.constant 0 : index
    %4 = vector.load %arg3[%c0_7, %c0_8, %c0_9] : memref<9x1x256xf32, #tpu.memory_space<vmem>>, vector<9x1x256xf32>
    %cst = arith.constant 0.000000e+00 : f32
    %5 = vector.broadcast %cst : f32 to vector<4x256xf32>
    %c0_10 = arith.constant 0 : index
    %c0_11 = arith.constant 0 : index
    %c0_12 = arith.constant 0 : index
    %6 = vector.load %arg4[%c0_10, %c0_11, %c0_12] : memref<2x4x256xf32, #tpu.memory_space<vmem>>, vector<1x4x256xf32>
    %7 = vector.shape_cast %6 : vector<1x4x256xf32> to vector<4x256xf32>
    %8 = vector.broadcast %0 : vector<4x1xf32> to vector<4x256xf32>
    %9 = arith.mulf %7, %8 : vector<4x256xf32>
    %10 = vector.broadcast %1 : vector<4x1xf32> to vector<4x256xf32>
    %11 = arith.addf %9, %10 : vector<4x256xf32>
    %cst_13 = arith.constant 0.000000e+00 : f32
    %12 = vector.broadcast %cst_13 : f32 to vector<4x256xf32>
    %13 = arith.maximumf %11, %12 : vector<4x256xf32>
    %14 = tpu.concatenate %13, %5 in 0 : vector<4x256xf32>, vector<4x256xf32> -> vector<8x256xf32>
    %c17_i32 = arith.constant 17 : i32
    %15 = tpu.dynamic_rotate %14 by %c17_i32 dim 1 : vector<8x256xf32>, i32 -> vector<8x256xf32>
    %16 = vector.extract_strided_slice %4 {offsets = [0, 0, 0], sizes = [1, 1, 256], strides = [1, 1, 1]} : vector<9x1x256xf32> to vector<1x1x256xf32>
    %17 = vector.shape_cast %16 : vector<1x1x256xf32> to vector<1x256xf32>
    %18 = vector.broadcast %17 : vector<1x256xf32> to vector<8x256xf32>
    %19 = arith.mulf %15, %18 : vector<8x256xf32>
    %c16_i32 = arith.constant 16 : i32
    %20 = tpu.dynamic_rotate %14 by %c16_i32 dim 1 : vector<8x256xf32>, i32 -> vector<8x256xf32>
    %21 = vector.extract_strided_slice %4 {offsets = [1, 0, 0], sizes = [1, 1, 256], strides = [1, 1, 1]} : vector<9x1x256xf32> to vector<1x1x256xf32>
    %22 = vector.shape_cast %21 : vector<1x1x256xf32> to vector<1x256xf32>
    %23 = vector.broadcast %22 : vector<1x256xf32> to vector<8x256xf32>
    %24 = arith.mulf %20, %23 : vector<8x256xf32>
    %c15_i32 = arith.constant 15 : i32
    %25 = tpu.dynamic_rotate %14 by %c15_i32 dim 1 : vector<8x256xf32>, i32 -> vector<8x256xf32>
    %26 = vector.extract_strided_slice %4 {offsets = [2, 0, 0], sizes = [1, 1, 256], strides = [1, 1, 1]} : vector<9x1x256xf32> to vector<1x1x256xf32>
    %27 = vector.shape_cast %26 : vector<1x1x256xf32> to vector<1x256xf32>
    %28 = vector.broadcast %27 : vector<1x256xf32> to vector<8x256xf32>
    %29 = arith.mulf %25, %28 : vector<8x256xf32>
    %c1_i32 = arith.constant 1 : i32
    %30 = tpu.dynamic_rotate %14 by %c1_i32 dim 1 : vector<8x256xf32>, i32 -> vector<8x256xf32>
    %31 = vector.extract_strided_slice %4 {offsets = [3, 0, 0], sizes = [1, 1, 256], strides = [1, 1, 1]} : vector<9x1x256xf32> to vector<1x1x256xf32>
    %32 = vector.shape_cast %31 : vector<1x1x256xf32> to vector<1x256xf32>
    %33 = vector.broadcast %32 : vector<1x256xf32> to vector<8x256xf32>
    %34 = arith.mulf %30, %33 : vector<8x256xf32>
    %c255_i32 = arith.constant 255 : i32
    %35 = tpu.dynamic_rotate %14 by %c255_i32 dim 1 : vector<8x256xf32>, i32 -> vector<8x256xf32>
    %36 = vector.extract_strided_slice %4 {offsets = [5, 0, 0], sizes = [1, 1, 256], strides = [1, 1, 1]} : vector<9x1x256xf32> to vector<1x1x256xf32>
    %37 = vector.shape_cast %36 : vector<1x1x256xf32> to vector<1x256xf32>
    %38 = vector.broadcast %37 : vector<1x256xf32> to vector<8x256xf32>
    %39 = arith.mulf %35, %38 : vector<8x256xf32>
    %c241_i32 = arith.constant 241 : i32
    %40 = tpu.dynamic_rotate %14 by %c241_i32 dim 1 : vector<8x256xf32>, i32 -> vector<8x256xf32>
    %41 = vector.extract_strided_slice %4 {offsets = [6, 0, 0], sizes = [1, 1, 256], strides = [1, 1, 1]} : vector<9x1x256xf32> to vector<1x1x256xf32>
    %42 = vector.shape_cast %41 : vector<1x1x256xf32> to vector<1x256xf32>
    %43 = vector.broadcast %42 : vector<1x256xf32> to vector<8x256xf32>
    %44 = arith.mulf %40, %43 : vector<8x256xf32>
    %c240_i32 = arith.constant 240 : i32
    %45 = tpu.dynamic_rotate %14 by %c240_i32 dim 1 : vector<8x256xf32>, i32 -> vector<8x256xf32>
    %46 = vector.extract_strided_slice %4 {offsets = [7, 0, 0], sizes = [1, 1, 256], strides = [1, 1, 1]} : vector<9x1x256xf32> to vector<1x1x256xf32>
    %47 = vector.shape_cast %46 : vector<1x1x256xf32> to vector<1x256xf32>
    %48 = vector.broadcast %47 : vector<1x256xf32> to vector<8x256xf32>
    %49 = arith.mulf %45, %48 : vector<8x256xf32>
    %c239_i32 = arith.constant 239 : i32
    %50 = tpu.dynamic_rotate %14 by %c239_i32 dim 1 : vector<8x256xf32>, i32 -> vector<8x256xf32>
    %51 = vector.extract_strided_slice %4 {offsets = [8, 0, 0], sizes = [1, 1, 256], strides = [1, 1, 1]} : vector<9x1x256xf32> to vector<1x1x256xf32>
    %52 = vector.shape_cast %51 : vector<1x1x256xf32> to vector<1x256xf32>
    %53 = vector.broadcast %52 : vector<1x256xf32> to vector<8x256xf32>
    %54 = arith.mulf %50, %53 : vector<8x256xf32>
    %55 = tpu.concatenate %19, %24, %29, %34, %14, %39, %44, %49, %54 in 0 : vector<8x256xf32>, vector<8x256xf32>, vector<8x256xf32>, vector<8x256xf32>, vector<8x256xf32>, vector<8x256xf32>, vector<8x256xf32>, vector<8x256xf32>, vector<8x256xf32> -> vector<72x256xf32>
    %c1 = arith.constant 1 : index
    %c0_14 = arith.constant 0 : index
    %c0_15 = arith.constant 0 : index
    %56 = vector.load %arg4[%c1, %c0_14, %c0_15] : memref<2x4x256xf32, #tpu.memory_space<vmem>>, vector<1x4x256xf32>
    %57 = vector.shape_cast %56 : vector<1x4x256xf32> to vector<4x256xf32>
    %58 = vector.broadcast %0 : vector<4x1xf32> to vector<4x256xf32>
    %59 = arith.mulf %57, %58 : vector<4x256xf32>
    %60 = vector.broadcast %1 : vector<4x1xf32> to vector<4x256xf32>
    %61 = arith.addf %59, %60 : vector<4x256xf32>
    %cst_16 = arith.constant 0.000000e+00 : f32
    %62 = vector.broadcast %cst_16 : f32 to vector<4x256xf32>
    %63 = arith.maximumf %61, %62 : vector<4x256xf32>
    %64 = tpu.concatenate %63, %5 in 0 : vector<4x256xf32>, vector<4x256xf32> -> vector<8x256xf32>
    %c17_i32_17 = arith.constant 17 : i32
    %65 = tpu.dynamic_rotate %64 by %c17_i32_17 dim 1 : vector<8x256xf32>, i32 -> vector<8x256xf32>
    %66 = vector.extract_strided_slice %4 {offsets = [0, 0, 0], sizes = [1, 1, 256], strides = [1, 1, 1]} : vector<9x1x256xf32> to vector<1x1x256xf32>
    %67 = vector.shape_cast %66 : vector<1x1x256xf32> to vector<1x256xf32>
    %68 = vector.broadcast %67 : vector<1x256xf32> to vector<8x256xf32>
    %69 = arith.mulf %65, %68 : vector<8x256xf32>
    %c16_i32_18 = arith.constant 16 : i32
    %70 = tpu.dynamic_rotate %64 by %c16_i32_18 dim 1 : vector<8x256xf32>, i32 -> vector<8x256xf32>
    %71 = vector.extract_strided_slice %4 {offsets = [1, 0, 0], sizes = [1, 1, 256], strides = [1, 1, 1]} : vector<9x1x256xf32> to vector<1x1x256xf32>
    %72 = vector.shape_cast %71 : vector<1x1x256xf32> to vector<1x256xf32>
    %73 = vector.broadcast %72 : vector<1x256xf32> to vector<8x256xf32>
    %74 = arith.mulf %70, %73 : vector<8x256xf32>
    %c15_i32_19 = arith.constant 15 : i32
    %75 = tpu.dynamic_rotate %64 by %c15_i32_19 dim 1 : vector<8x256xf32>, i32 -> vector<8x256xf32>
    %76 = vector.extract_strided_slice %4 {offsets = [2, 0, 0], sizes = [1, 1, 256], strides = [1, 1, 1]} : vector<9x1x256xf32> to vector<1x1x256xf32>
    %77 = vector.shape_cast %76 : vector<1x1x256xf32> to vector<1x256xf32>
    %78 = vector.broadcast %77 : vector<1x256xf32> to vector<8x256xf32>
    %79 = arith.mulf %75, %78 : vector<8x256xf32>
    %c1_i32_20 = arith.constant 1 : i32
    %80 = tpu.dynamic_rotate %64 by %c1_i32_20 dim 1 : vector<8x256xf32>, i32 -> vector<8x256xf32>
    %81 = vector.extract_strided_slice %4 {offsets = [3, 0, 0], sizes = [1, 1, 256], strides = [1, 1, 1]} : vector<9x1x256xf32> to vector<1x1x256xf32>
    %82 = vector.shape_cast %81 : vector<1x1x256xf32> to vector<1x256xf32>
    %83 = vector.broadcast %82 : vector<1x256xf32> to vector<8x256xf32>
    %84 = arith.mulf %80, %83 : vector<8x256xf32>
    %c255_i32_21 = arith.constant 255 : i32
    %85 = tpu.dynamic_rotate %64 by %c255_i32_21 dim 1 : vector<8x256xf32>, i32 -> vector<8x256xf32>
    %86 = vector.extract_strided_slice %4 {offsets = [5, 0, 0], sizes = [1, 1, 256], strides = [1, 1, 1]} : vector<9x1x256xf32> to vector<1x1x256xf32>
    %87 = vector.shape_cast %86 : vector<1x1x256xf32> to vector<1x256xf32>
    %88 = vector.broadcast %87 : vector<1x256xf32> to vector<8x256xf32>
    %89 = arith.mulf %85, %88 : vector<8x256xf32>
    %c241_i32_22 = arith.constant 241 : i32
    %90 = tpu.dynamic_rotate %64 by %c241_i32_22 dim 1 : vector<8x256xf32>, i32 -> vector<8x256xf32>
    %91 = vector.extract_strided_slice %4 {offsets = [6, 0, 0], sizes = [1, 1, 256], strides = [1, 1, 1]} : vector<9x1x256xf32> to vector<1x1x256xf32>
    %92 = vector.shape_cast %91 : vector<1x1x256xf32> to vector<1x256xf32>
    %93 = vector.broadcast %92 : vector<1x256xf32> to vector<8x256xf32>
    %94 = arith.mulf %90, %93 : vector<8x256xf32>
    %c240_i32_23 = arith.constant 240 : i32
    %95 = tpu.dynamic_rotate %64 by %c240_i32_23 dim 1 : vector<8x256xf32>, i32 -> vector<8x256xf32>
    %96 = vector.extract_strided_slice %4 {offsets = [7, 0, 0], sizes = [1, 1, 256], strides = [1, 1, 1]} : vector<9x1x256xf32> to vector<1x1x256xf32>
    %97 = vector.shape_cast %96 : vector<1x1x256xf32> to vector<1x256xf32>
    %98 = vector.broadcast %97 : vector<1x256xf32> to vector<8x256xf32>
    %99 = arith.mulf %95, %98 : vector<8x256xf32>
    %c239_i32_24 = arith.constant 239 : i32
    %100 = tpu.dynamic_rotate %64 by %c239_i32_24 dim 1 : vector<8x256xf32>, i32 -> vector<8x256xf32>
    %101 = vector.extract_strided_slice %4 {offsets = [8, 0, 0], sizes = [1, 1, 256], strides = [1, 1, 1]} : vector<9x1x256xf32> to vector<1x1x256xf32>
    %102 = vector.shape_cast %101 : vector<1x1x256xf32> to vector<1x256xf32>
    %103 = vector.broadcast %102 : vector<1x256xf32> to vector<8x256xf32>
    %104 = arith.mulf %100, %103 : vector<8x256xf32>
    %105 = tpu.concatenate %69, %74, %79, %84, %64, %89, %94, %99, %104 in 0 : vector<8x256xf32>, vector<8x256xf32>, vector<8x256xf32>, vector<8x256xf32>, vector<8x256xf32>, vector<8x256xf32>, vector<8x256xf32>, vector<8x256xf32>, vector<8x256xf32> -> vector<72x256xf32>
    %106 = tpu.concatenate %55, %105 in 1 : vector<72x256xf32>, vector<72x256xf32> -> vector<72x512xf32>
    %cst_25 = arith.constant dense<0.000000e+00> : vector<8x512xf32>
    %107 = tpu.matmul %2, %106, %cst_25 {dimension_numbers = #tpu.dot_dimension_numbers<[1], [0], [0], [1], [0, 0, 1, 1], [], []>} : vector<8x72xf32>, vector<72x512xf32>, vector<8x512xf32> -> vector<8x512xf32>
    %108 = vector.broadcast %3 : vector<8x1xf32> to vector<8x512xf32>
    %109 = arith.addf %107, %108 : vector<8x512xf32>
    %110 = vector.extract_strided_slice %109 {offsets = [0, 0], sizes = [8, 256], strides = [1, 1]} : vector<8x512xf32> to vector<8x256xf32>
    %c0_26 = arith.constant 0 : index
    %c0_27 = arith.constant 0 : index
    %c0_28 = arith.constant 0 : index
    %111 = vector.load %arg7[%c0_26, %c0_27, %c0_28] : memref<2x8x256xf32, #tpu.memory_space<vmem>>, vector<1x8x256xf32>
    %112 = vector.shape_cast %111 : vector<1x8x256xf32> to vector<8x256xf32>
    %113 = vector.shape_cast %110 : vector<8x256xf32> to vector<1x8x256xf32>
    tpu.vector_store %arg7[%c0_26, %c0_27, %c0_28], %113 {strides = array<i32>} : memref<2x8x256xf32, #tpu.memory_space<vmem>>, vector<1x8x256xf32>,
    %114 = vector.extract_strided_slice %109 {offsets = [0, 256], sizes = [8, 256], strides = [1, 1]} : vector<8x512xf32> to vector<8x256xf32>
    %c1_29 = arith.constant 1 : index
    %c0_30 = arith.constant 0 : index
    %c0_31 = arith.constant 0 : index
    %115 = vector.load %arg7[%c1_29, %c0_30, %c0_31] : memref<2x8x256xf32, #tpu.memory_space<vmem>>, vector<1x8x256xf32>
    %116 = vector.shape_cast %115 : vector<1x8x256xf32> to vector<8x256xf32>
    %117 = vector.shape_cast %114 : vector<8x256xf32> to vector<1x8x256xf32>
    tpu.vector_store %arg7[%c1_29, %c0_30, %c0_31], %117 {strides = array<i32>} : memref<2x8x256xf32, #tpu.memory_space<vmem>>, vector<1x8x256xf32>,
    return
  }
  func.func @transform_0(%arg0: i32) -> (i32, i32) {
    %c0_i32 = arith.constant 0 : i32
    %c0_i32_0 = arith.constant 0 : i32
    %c0_i32_1 = arith.constant 0 : i32
    return %c0_i32, %c0_i32_0 : i32, i32
  }
  func.func @transform_1(%arg0: i32) -> (i32, i32) {
    %c0_i32 = arith.constant 0 : i32
    %c0_i32_0 = arith.constant 0 : i32
    %c0_i32_1 = arith.constant 0 : i32
    return %c0_i32, %c0_i32_0 : i32, i32
  }
  func.func @transform_2(%arg0: i32) -> (i32, i32, i32) {
    %c0_i32 = arith.constant 0 : i32
    %c0_i32_0 = arith.constant 0 : i32
    %c0_i32_1 = arith.constant 0 : i32
    %c0_i32_2 = arith.constant 0 : i32
    return %c0_i32, %c0_i32_0, %c0_i32_1 : i32, i32, i32
  }
  func.func @transform_3(%arg0: i32) -> (i32, i32, i32) {
    %c0_i32 = arith.constant 0 : i32
    %c0_i32_0 = arith.constant 0 : i32
    %c0_i32_1 = arith.constant 0 : i32
    return %arg0, %c0_i32, %c0_i32_0 : i32, i32, i32
  }
  func.func @transform_4(%arg0: i32) -> (i32, i32) {
    %c0_i32 = arith.constant 0 : i32
    %c0_i32_0 = arith.constant 0 : i32
    %c0_i32_1 = arith.constant 0 : i32
    return %c0_i32, %c0_i32_0 : i32, i32
  }
  func.func @transform_5(%arg0: i32) -> (i32, i32) {
    %c0_i32 = arith.constant 0 : i32
    %c0_i32_0 = arith.constant 0 : i32
    %c0_i32_1 = arith.constant 0 : i32
    return %c0_i32, %c0_i32_0 : i32, i32
  }
  func.func @transform_6(%arg0: i32) -> (i32, i32, i32) {
    %c0_i32 = arith.constant 0 : i32
    %c0_i32_0 = arith.constant 0 : i32
    %c0_i32_1 = arith.constant 0 : i32
    return %arg0, %c0_i32, %c0_i32_0 : i32, i32, i32
  }
}

</mosaic_0001>

<bundles_post_ra>
// kernel: tpu_custom_call.1
= control target key start
LH: loop header
LB: loop body
LE: loop exit
PB: predicated region body
PF: predicated region fallthrough
CT: control target
= control target key end

     0   :  { %11 = vsyncpa [#allocation3], 0  ;;  %s856_s0 = inlined_call_operand.vmem [shape: f32[4,1], index: 0, kind: input, shape index: {}]   ;;  %s857_s1 = inlined_call_operand.vmem [shape: f32[4,1], index: 1, kind: input, shape index: {}]   ;;  %s858_s2 = inlined_call_operand.vmem [shape: f32[9,1,256], index: 2, kind: input, shape index: {}]   ;;  %s859_s3 = inlined_call_operand.hbm [shape: f32[2,4,256], index: 3, kind: input, shape index: {}]   ;;  %s860_s4 = inlined_call_operand.vmem [shape: f32[8,72], index: 4, kind: input, shape index: {}]   ;;  %s861_s5 = inlined_call_operand.vmem [shape: f32[8,1], index: 5, kind: input, shape index: {}]   ;;  %s862_s6 = inlined_call_operand.hbm [shape: f32[2,8,256], index: 6, kind: output, shape index: {}]  }
   0x1   :  { %12 = vsyncpa [#allocation4], 0  ;;  %s601_s21 = smov [#allocation2]   ;;  %s553_s25 = scalar_lea.hbm %s859_s3, 256 }
   0x2   :  { %s24_s22 = sshll.u32 %s601_s21, 4  ;;  %p554_p0 = scmp.ne.s32.totalorder %s859_s3, %s553_s25  ;;  %s25_s22 = int_to_ptr.vmem [resolvable:$true] %s24_s22 }
   0x3   :  { %p557_p1 = scmp.lt.u32.totalorder %s553_s25, %s859_s3 }
   0x5   :  { %p559_p2 = pnand %p557_p1, %p554_p0 }
   0x7   :  { %562 = shalt.err (!%p559_p2)
}
   0x8   :  { %s563_s30 = scalar_lea.vmem %s25_s22, 256  ;;  %p568_p4 = scmp.lt.s32.totalorder %s25_s22, %s25_s22 }
   0x9   :  { %p564_p3 = scmp.ne.s32.totalorder %s25_s22, %s563_s30  ;;  %p569_p5 = scmp.lt.s32.totalorder %s563_s30, %s563_s30 }
   0xb   :  { %p570_p6 = por %p569_p5, %p568_p4 }
   0xd   :  { %p571_p7 = pnand %p570_p6, %p564_p3 }
   0xf   :  { %574 = shalt.err (!%p571_p7)
}
  0x10   :  { %s602_s7 = smov 128   ;;  %s603_s8 = smov 8  }
  0x11   :  { %30 = dma.hbm_to_vmem [thread:$0]  %s859_s3, 256, %s25_s22, [#allocation3], %s602_s7, %s602_s7, %s603_s8  }
  0x12   :  { %597 = dma.done.wait [#allocation3], 256  }
  0x13   :  { %598 = vsyncadd [#allocation3], 4294967040  ;;  %v604_v0 = vmov 0   ;;  %v38_v1 = vld [vmem:[%s856_s0] sm:$0xf]  ;;  %v58_v5 = vlaneseq  ;;  %v50_v11 = vld [vmem:[#allocation2] sm:$0xff] }
  0x14   :  { %552 = vset.pattern.permute.xlu0 %v604_v0  ;;  %v39_v2 = vld [vmem:[%s857_s1] sm:$0xf]  ;;  %v605_v3 = vmov 839922192   ;;  %v247_v12 = vld [vmem:[#allocation2 + $0x8] sm:$0xff]  ;;  %vm81_vm0 = vcmask 1043456  }
  0x15   :  { %53 = vperm.xlu0 %552, %v38_v1   ;;  %v56_v4 = vunpack.c.l.s4 %v605_v3  ;;  %v672_v7 = vshrl.u32 %v58_v5, 7  ;;  %s606_s0 = smov 16   ;;  %s607_s1 = smov 17   ;;  %v613_v27 = vmov 0.0   ;;  %v41_v28 = vld [vmem:[%s861_s5] sm:$0xff]  ;;  %v703_v29 = vand.u32 127, %v58_v5 }
  0x16   :  { %s608_s3 = smov 15   ;;  %s609_s15 = smov 1   ;;  %393 = vmatprep.mubr.f32.mxu0 %v613_v27  ;;  %464 = vmatprep.mubr.f32.mxu1 %v613_v27  ;;  %v42_v32 = vld [vmem:[%s858_s2] sm:$0x3]  ;;  %v43_v37 = vld [vmem:[%s858_s2 + $0x2] sm:$0x3] }
  0x17   :  { %v57_v6 = vunpack.c.0.s8 %v56_v4  ;;  %s610_s16 = smov 127   ;;  %s611_s17 = smov 113   ;;  %v706_v30 = vsub.s32 0, %v672_v7  ;;  %v709_v31 = vsub.s32 1, %v672_v7  ;;  %vm90_vm1 = vcmp.lt.s32.totalorder %v703_v29, 17 }
  0x18   :  { %s612_s18 = smov 112   ;;  %s614_s19 = smov 111   ;;  %vm110_vm2 = vcmp.lt.s32.totalorder %v703_v29, 16  ;;  %v44_v60 = vld [vmem:[%s858_s2 + $0x4] sm:$0x3]  ;;  %vm130_vm3 = vcmp.lt.s32.totalorder %v703_v29, 15 }
  0x19   :  { %66 = vperm.xlu0 %552, %v39_v2   ;;  %v60_v8 = vsub.s32 %v57_v6, %v672_v7  ;;  %v97_v35 = vrot.slane %v42_v32, %v706_v30  ;;  %v101_v36 = vrot.slane %v42_v32, %v709_v31  ;;  %v117_v43 = vrot.slane %v43_v37, %v706_v30  ;;  %v45_v5 = vld [vmem:[%s858_s2 + $0x6] sm:$0x3] }
  0x1a   :  { %v121_v45 = vrot.slane %v43_v37, %v709_v31  ;;  %v137_v2 = vrot.slane %v44_v60, %v706_v30  ;;  %v141_v3 = vrot.slane %v44_v60, %v709_v31  ;;  %vm150_vm4 = vcmp.lt.s32.totalorder %v703_v29, 1  ;;  %v46_v37 = vld [vmem:[%s858_s2 + $0xa] sm:$0x3] }
  0x1b   :  { %vm170_vm5 = vcmp.lt.s32.totalorder %v703_v29, 127  ;;  %vm615_vm6 = vmmov 1   ;;  %vm190_vm8 = vcmp.lt.s32.totalorder %v703_v29, 113  ;;  %vm210_vm9 = vcmp.lt.s32.totalorder %v703_v29, 112 }
  0x1c   :  { %vm778_vm7 = vmpackc.low %vm615_vm6, %vm81_vm0  ;;  %vm230_vm10 = vcmp.lt.s32.totalorder %v703_v29, 111  ;;  %vm325_vm11 = vcmask 588800  }
  0x94   :  { %v54_v9 = vpop.permute.xlu0 %53 }
  0x95   :  { %v61_v10 = vrot.slane %v54_v9, %v60_v8 }
  0x97   :  { %v63_v14 = vmul.f32 %v61_v10, %v50_v11  ;;  %v248_v15 = vmul.f32 %v247_v12, %v61_v10 }
  0x98   :  { %v67_v13 = vpop.permute.xlu0 %66 }
  0x99   :  { %v74_v16 = vrot.slane %v67_v13, %v60_v8 }
  0x9b   :  { %v76_v17 = vadd.f32 %v74_v16, %v63_v14  ;;  %v249_v18 = vadd.f32 %v248_v15, %v74_v16  ;;  %v157_v14 = vrot.slane %v45_v5, %v706_v30  ;;  %v161_v15 = vrot.slane %v45_v5, %v709_v31 }
  0x9d   :  { %v675_v19 = vmax.f32 %v76_v17, 0.0  ;;  %v683_v22 = vmax.f32 %v249_v18, 0.0 }
  0x9f   :  { %v679_v20 = vcombine.high %v675_v19, %v675_v19  ;;  %v82_v21 = vsel %vm81_vm0, %v675_v19, 0.0  ;;  %v254_v24 = vsel %vm81_vm0, %v683_v22, 0.0  ;;  %v692_v25 = vcombine.high %v683_v22, %v683_v22 }
  0xa0   :  { %106 = vrot.lane.b32.xlu0 %v82_v21, %s606_s0  ;;  %84 = vrot.lane.b32.xlu1 %v82_v21, %s607_s1 }
  0xa1   :  { %v83_v23 = vsel %vm81_vm0, %v679_v20, 0.0  ;;  %v255_v26 = vsel %vm81_vm0, %v692_v25, 0.0 }
  0xa4   :  { %256 = vrot.lane.b32.xlu0 %v254_v24, %s607_s1  ;;  %86 = vrot.lane.b32.xlu1 %v83_v23, %s607_s1 }
  0xa8   :  { %264 = vrot.lane.b32.xlu0 %v254_v24, %s606_s0  ;;  %108 = vrot.lane.b32.xlu1 %v83_v23, %s606_s0 }
  0xac   :  { %126 = vrot.lane.b32.xlu0 %v82_v21, %s608_s3  ;;  %258 = vrot.lane.b32.xlu1 %v255_v26, %s607_s1 }
  0xb0   :  { %146 = vrot.lane.b32.xlu0 %v82_v21, %s609_s15  ;;  %266 = vrot.lane.b32.xlu1 %v255_v26, %s606_s0 }
  0xb4   :  { %272 = vrot.lane.b32.xlu0 %v254_v24, %s608_s3  ;;  %128 = vrot.lane.b32.xlu1 %v83_v23, %s608_s3 }
  0xb8   :  { %280 = vrot.lane.b32.xlu0 %v254_v24, %s609_s15  ;;  %148 = vrot.lane.b32.xlu1 %v83_v23, %s609_s15 }
  0xbc   :  { %166 = vrot.lane.b32.xlu0 %v82_v21, %s610_s16  ;;  %274 = vrot.lane.b32.xlu1 %v255_v26, %s608_s3 }
  0xc0   :  { %288 = vrot.lane.b32.xlu0 %v254_v24, %s610_s16  ;;  %282 = vrot.lane.b32.xlu1 %v255_v26, %s609_s15 }
  0xc4   :  { %186 = vrot.lane.b32.xlu0 %v82_v21, %s611_s17  ;;  %168 = vrot.lane.b32.xlu1 %v83_v23, %s610_s16 }
  0xc8   :  { %206 = vrot.lane.b32.xlu0 %v82_v21, %s612_s18  ;;  %290 = vrot.lane.b32.xlu1 %v255_v26, %s610_s16 }
  0xcc   :  { %296 = vrot.lane.b32.xlu0 %v254_v24, %s611_s17  ;;  %188 = vrot.lane.b32.xlu1 %v83_v23, %s611_s17 }
  0xd0   :  { %304 = vrot.lane.b32.xlu0 %v254_v24, %s612_s18  ;;  %208 = vrot.lane.b32.xlu1 %v83_v23, %s612_s18 }
  0xd4   :  { %226 = vrot.lane.b32.xlu0 %v82_v21, %s614_s19  ;;  %298 = vrot.lane.b32.xlu1 %v255_v26, %s611_s17 }
  0xd8   :  { %312 = vrot.lane.b32.xlu0 %v254_v24, %s614_s19  ;;  %306 = vrot.lane.b32.xlu1 %v255_v26, %s612_s18 }
  0xdc   :  { %322 = vperm.xlu0 %552, %v41_v28   ;;  %228 = vrot.lane.b32.xlu1 %v83_v23, %s614_s19 }
  0xe0   :  { %314 = vrot.lane.b32.xlu1 %v255_v26, %s614_s19 }
 0x112   :  { %v107_v33 = vpop.permute.xlu0 %106  ;;  %v85_v34 = vpop.permute.xlu1 %84 }
 0x116   :  { %v257_v38 = vpop.permute.xlu0 %256  ;;  %v87_v39 = vpop.permute.xlu1 %86 }
 0x117   :  { %v91_v40 = vsel %vm90_vm1, %v85_v34, %v87_v39  ;;  %v92_v41 = vsel %vm90_vm1, %v87_v39, %v85_v34 }
 0x118   :  { %v104_v42 = vmul.f32 %v97_v35, %v92_v41  ;;  %v105_v44 = vmul.f32 %v101_v36, %v91_v40 }
 0x11a   :  { %v265_v46 = vpop.permute.xlu0 %264  ;;  %v109_v47 = vpop.permute.xlu1 %108 }
 0x11b   :  { %v111_v48 = vsel %vm110_vm2, %v107_v33, %v109_v47  ;;  %v112_v49 = vsel %vm110_vm2, %v109_v47, %v107_v33 }
 0x11c   :  { %v124_v50 = vmul.f32 %v117_v43, %v112_v49  ;;  %v125_v51 = vmul.f32 %v121_v45, %v111_v48 }
 0x11e   :  { %v127_v52 = vpop.permute.xlu0 %126  ;;  %v259_v53 = vpop.permute.xlu1 %258  ;;  %v499_v54 = vpack.c.bf16 %v125_v51, %v105_v44  ;;  %v501_v55 = vpack.c.bf16 %v124_v50, %v104_v42  ;;  %v177_v44 = vrot.slane %v46_v37, %v706_v30 }
 0x11f   :  { %v260_v56 = vsel %vm90_vm1, %v257_v38, %v259_v53  ;;  %v261_v57 = vsel %vm90_vm1, %v259_v53, %v257_v38 }
 0x120   :  { %v262_v58 = vmul.f32 %v261_v57, %v97_v35  ;;  %500 = vmatprep.subr.bf16.mxu0 %v499_v54  ;;  %v263_v59 = vmul.f32 %v260_v56, %v101_v36 }
 0x121   :  { %502 = vmatpush1.bf16.msra.mxu0 %v501_v55  ;;  %v47_v55 = vld [vmem:[%s858_s2 + $0xc] sm:$0x3] }
 0x122   :  { %v147_v61 = vpop.permute.xlu0 %146  ;;  %v267_v62 = vpop.permute.xlu1 %266 }
 0x123   :  { %v268_v63 = vsel %vm110_vm2, %v265_v46, %v267_v62  ;;  %v269_v0 = vsel %vm110_vm2, %v267_v62, %v265_v46 }
 0x124   :  { %v270_v1 = vmul.f32 %v269_v0, %v117_v43  ;;  %v271_v4 = vmul.f32 %v268_v63, %v121_v45  ;;  %v181_v45 = vrot.slane %v46_v37, %v709_v31  ;;  %v197_v0 = vrot.slane %v47_v55, %v706_v30 }
 0x126   :  { %v273_v6 = vpop.permute.xlu0 %272  ;;  %v129_v7 = vpop.permute.xlu1 %128  ;;  %v517_v8 = vpack.c.bf16 %v271_v4, %v263_v59  ;;  %v519_v9 = vpack.c.bf16 %v270_v1, %v262_v58 }
 0x127   :  { %v131_v10 = vsel %vm130_vm3, %v127_v52, %v129_v7  ;;  %v132_v11 = vsel %vm130_vm3, %v129_v7, %v127_v52 }
 0x128   :  { %v144_v12 = vmul.f32 %v137_v2, %v132_v11  ;;  %v145_v13 = vmul.f32 %v141_v3, %v131_v10  ;;  %518 = vmatprep.subr.bf16.mxu1 %v517_v8 }
 0x129   :  { %520 = vmatpush1.bf16.msra.mxu1 %v519_v9 }
 0x12a   :  { %v281_v16 = vpop.permute.xlu0 %280  ;;  %v149_v17 = vpop.permute.xlu1 %148 }
 0x12b   :  { %v151_v18 = vsel %vm150_vm4, %v147_v61, %v149_v17  ;;  %v152_v21 = vsel %vm150_vm4, %v149_v17, %v147_v61 }
 0x12c   :  { %v164_v23 = vmul.f32 %v157_v14, %v152_v21  ;;  %v165_v24 = vmul.f32 %v161_v15, %v151_v18 }
 0x12e   :  { %v167_v26 = vpop.permute.xlu0 %166  ;;  %v275_v27 = vpop.permute.xlu1 %274  ;;  %v503_v28 = vpack.c.bf16 %v165_v24, %v145_v13  ;;  %v505_v32 = vpack.c.bf16 %v164_v23, %v144_v12 }
 0x12f   :  { %v276_v33 = vsel %vm130_vm3, %v273_v6, %v275_v27  ;;  %v277_v34 = vsel %vm130_vm3, %v275_v27, %v273_v6 }
 0x130   :  { %v278_v35 = vmul.f32 %v277_v34, %v137_v2  ;;  %v279_v36 = vmul.f32 %v276_v33, %v141_v3  ;;  %504 = vmatprep.subr.bf16.mxu0 %v503_v28 }
 0x131   :  { %506 = vmatpush1.bf16.msra.mxu0 %v505_v32 }
 0x132   :  { %v289_v38 = vpop.permute.xlu0 %288  ;;  %v283_v39 = vpop.permute.xlu1 %282 }
 0x133   :  { %v284_v40 = vsel %vm150_vm4, %v281_v16, %v283_v39  ;;  %v285_v41 = vsel %vm150_vm4, %v283_v39, %v281_v16 }
 0x134   :  { %v286_v42 = vmul.f32 %v285_v41, %v157_v14  ;;  %v287_v43 = vmul.f32 %v284_v40, %v161_v15 }
 0x136   :  { %v187_v46 = vpop.permute.xlu0 %186  ;;  %v169_v47 = vpop.permute.xlu1 %168  ;;  %v521_v48 = vpack.c.bf16 %v287_v43, %v279_v36  ;;  %v523_v49 = vpack.c.bf16 %v286_v42, %v278_v35 }
 0x137   :  { %v171_v50 = vsel %vm170_vm5, %v167_v26, %v169_v47  ;;  %v172_v51 = vsel %vm170_vm5, %v169_v47, %v167_v26  ;;  %v49_v26 = vld [vmem:[%s858_s2 + $0x10] sm:$0x3] }
 0x138   :  { %v184_v52 = vmul.f32 %v177_v44, %v171_v50  ;;  %v185_v53 = vmul.f32 %v181_v45, %v172_v51  ;;  %522 = vmatprep.subr.bf16.mxu1 %v521_v48  ;;  %v237_v36 = vrot.slane %v49_v26, %v706_v30  ;;  %v241_v37 = vrot.slane %v49_v26, %v709_v31 }
 0x139   :  { %524 = vmatpush1.bf16.msra.mxu1 %v523_v49 }
 0x13a   :  { %v507_v56 = vpack.c.bf16 %v185_v53, %v679_v20  ;;  %v510_v57 = vpack.c.bf16 %v184_v52, %v675_v19  ;;  %v207_v58 = vpop.permute.xlu0 %206  ;;  %v291_v59 = vpop.permute.xlu1 %290  ;;  %v201_v20 = vrot.slane %v47_v55, %v709_v31  ;;  %v48_v19 = vld [vmem:[%s858_s2 + $0xe] sm:$0x3] }
 0x13b   :  { %v292_v60 = vsel %vm170_vm5, %v289_v38, %v291_v59  ;;  %v293_v61 = vsel %vm170_vm5, %v291_v59, %v289_v38  ;;  %v217_v9 = vrot.slane %v48_v19, %v706_v30 }
 0x13c   :  { %v294_v62 = vmul.f32 %v292_v60, %v177_v44  ;;  %v295_v63 = vmul.f32 %v293_v61, %v181_v45  ;;  %509 = vmatprep.subr.msk.bf16.mxu0 %vm778_vm7, %v507_v56  ;;  %v40_v45 = vld [vmem:[%s860_s4] sm:$0xff]  ;;  %s616_s4 = smov [#allocation5]  }
 0x13d   :  { %512 = vmatpush1.bf16.msk.msra.mxu0 %vm778_vm7, %v510_v57  ;;  %s481_s14 = sshll.u32 %s616_s4, 4  ;;  %s482_s14 = int_to_ptr.vmem [resolvable:$true] %s481_s14 }
 0x13e   :  { %v525_v1 = vpack.c.bf16 %v295_v63, %v692_v25  ;;  %v528_v2 = vpack.c.bf16 %v294_v62, %v683_v22  ;;  %v189_v3 = vpop.permute.xlu1 %188  ;;  %v297_v6 = vpop.permute.xlu0 %296  ;;  %v221_v25 = vrot.slane %v48_v19, %v709_v31  ;;  %s575_s1 = scalar_lea.vmem %s482_s14, 512  ;;  %p580_p9 = scmp.lt.s32.totalorder %s482_s14, %s482_s14 }
 0x13f   :  { %v191_v4 = vsel %vm190_vm8, %v187_v46, %v189_v3  ;;  %v192_v5 = vsel %vm190_vm8, %v189_v3, %v187_v46  ;;  %p576_p8 = scmp.ne.s32.totalorder %s482_s14, %s575_s1  ;;  %p581_p10 = scmp.lt.s32.totalorder %s575_s1, %s575_s1 }
 0x140   :  { %v204_v7 = vmul.f32 %v197_v0, %v191_v4  ;;  %v205_v8 = vmul.f32 %v201_v20, %v192_v5  ;;  %527 = vmatprep.subr.msk.bf16.mxu1 %vm778_vm7, %v525_v1 }
 0x141   :  { %530 = vmatpush1.bf16.msk.msra.mxu1 %vm778_vm7, %v528_v2  ;;  %p582_p11 = por %p581_p10, %p580_p9 }
 0x142   :  { %v209_v22 = vpop.permute.xlu1 %208  ;;  %v305_v14 = vpop.permute.xlu0 %304 }
 0x143   :  { %v211_v10 = vsel %vm210_vm9, %v207_v58, %v209_v22  ;;  %v212_v11 = vsel %vm210_vm9, %v209_v22, %v207_v58  ;;  %p583_p12 = pnand %p582_p11, %p576_p8 }
 0x144   :  { %v224_v12 = vmul.f32 %v217_v9, %v211_v10  ;;  %v225_v13 = vmul.f32 %v221_v25, %v212_v11 }
 0x146   :  { %v299_v15 = vpop.permute.xlu1 %298  ;;  %v513_v16 = vpack.c.bf16 %v225_v13, %v205_v8  ;;  %v515_v17 = vpack.c.bf16 %v224_v12, %v204_v7  ;;  %v227_v33 = vpop.permute.xlu0 %226 }
 0x147   :  { %v300_v18 = vsel %vm190_vm8, %v297_v6, %v299_v15  ;;  %v301_v21 = vsel %vm190_vm8, %v299_v15, %v297_v6 }
 0x148   :  { %v302_v23 = vmul.f32 %v300_v18, %v197_v0  ;;  %v303_v24 = vmul.f32 %v301_v21, %v201_v20  ;;  %514 = vmatprep.subr.bf16.mxu0 %v513_v16 }
 0x149   :  { %516 = vmatpush1.bf16.msra.mxu0 %v515_v17 }
 0x14a   :  { %v307_v27 = vpop.permute.xlu1 %306  ;;  %v313_v30 = vpop.permute.xlu0 %312 }
 0x14b   :  { %v308_v28 = vsel %vm210_vm9, %v305_v14, %v307_v27  ;;  %v309_v32 = vsel %vm210_vm9, %v307_v27, %v305_v14 }
 0x14c   :  { %v310_v34 = vmul.f32 %v308_v28, %v217_v9  ;;  %v311_v35 = vmul.f32 %v309_v32, %v221_v25 }
 0x14e   :  { %v229_v38 = vpop.permute.xlu1 %228  ;;  %v531_v39 = vpack.c.bf16 %v311_v35, %v303_v24  ;;  %v533_v40 = vpack.c.bf16 %v310_v34, %v302_v23 }
 0x14f   :  { %v231_v41 = vsel %vm230_vm10, %v227_v33, %v229_v38  ;;  %v232_v42 = vsel %vm230_vm10, %v229_v38, %v227_v33 }
 0x150   :  { %v244_v43 = vmul.f32 %v237_v36, %v231_v41  ;;  %v245_v44 = vmul.f32 %v241_v37, %v232_v42  ;;  %532 = vmatprep.subr.bf16.mxu1 %v531_v39 }
 0x151   :  { %534 = vmatpush1.bf16.msra.mxu1 %v533_v40 }
 0x152   :  { %345 = vmatprep.subr.mxu0 %v245_v44  ;;  %v315_v31 = vpop.permute.xlu1 %314 }
 0x153   :  { %v316_v46 = vsel %vm230_vm10, %v313_v30, %v315_v31  ;;  %v317_v47 = vsel %vm230_vm10, %v315_v31, %v313_v30  ;;  %346 = vmatpush1.msra.mxu0 %v244_v43 }
 0x154   :  { %v318_v48 = vmul.f32 %v316_v46, %v237_v36  ;;  %v319_v49 = vmul.f32 %v317_v47, %v241_v37  ;;  %495 = vmatmul.mubr.msk.f32.vlgmr.msra.gmra.mrb[0].mxu0 %vm325_vm11, %v40_v45 }
 0x156   :  { %416 = vmatprep.subr.mxu1 %v319_v49 }
 0x157   :  { %417 = vmatpush1.msra.mxu1 %v318_v48 }
 0x158   :  { %498 = vmatmul.mubr.msk.f32.vlgmr.msra.gmra.mrb[0].mxu1 %vm325_vm11, %v40_v45 }
 0x15b   :  { %v323_v50 = vpop.permute.xlu0 %322 }
 0x227   :  { %v395_v51 = vpop.f32.mrb[0].mxu0 }
 0x228   :  { %v396_v52 = vadd.f32 %v395_v51, %v323_v50  ;;  %v397_v53 = vpop.f32.mrb[1].mxu0 }
 0x229   :  { %v398_v54 = vadd.f32 %v397_v53, %v323_v50 }
 0x22a   :  { %471 = vst [vmem:[#allocation5] sm:$0xff] %v396_v52 }
 0x22b   :  { %472 = vst [vmem:[#allocation5 + $0x8] sm:$0xff] %v398_v54  ;;  %v466_v55 = vpop.f32.mrb[0].mxu1 }
 0x22c   :  { %v467_v56 = vadd.f32 %v466_v55, %v323_v50  ;;  %v468_v29 = vpop.f32.mrb[1].mxu1 }
 0x22d   :  { %v469_v57 = vadd.f32 %v468_v29, %v323_v50 }
 0x22e   :  { %474 = vst [vmem:[#allocation5 + $0x10] sm:$0xff] %v467_v56 }
 0x22f   :  { %475 = vst [vmem:[#allocation5 + $0x18] sm:$0xff] %v469_v57 }
 0x230   :  { %586 = shalt.err (!%p583_p12)
}
 0x231   :  { %s587_s16 = scalar_lea.hbm %s862_s6, 512 }
 0x232   :  { %p588_p13 = scmp.ne.s32.totalorder %s862_s6, %s587_s16  ;;  %p591_p0 = scmp.lt.u32.totalorder %s587_s16, %s862_s6 }
 0x234   :  { %p593_p1 = pnand %p591_p0, %p588_p13 }
 0x236   :  { %596 = shalt.err (!%p593_p1)
}
 0x237   :  { %s617_s21 = smov 256  }
 0x238   :  { %487 = dma.vmem_to_hbm [thread:$0]  %s482_s14, 512, %s862_s6, [#allocation4], %s617_s21, %s617_s21, %s606_s0  }
 0x239   :  { %599 = dma.done.wait [#allocation4], 512  }
 0x23a   :  { %600 = vsyncadd [#allocation4], 4294966784 }
 0x23b   :  { %491 = vsyncpa [#allocation3], 1 }
 0x23c   :  { %492 = vsyncpa [#allocation4], 1 }

</bundles_post_ra>
